<compile_context>
chip_gen: v7x
topology: tpu7x:2x2x1
jax: 0.10.0
libtpu: 0.0.40
codegen_flags: <defaults>
</compile_context>

<pallas_src>
import functools
import math

import jax
import jax.numpy as jnp
from jax.experimental import pallas as pl
from jax.experimental.pallas import tpu as pltpu

INF = 1e10  # same masking constant as the PyTorch module


def attention_kernel(q_ref, k_ref, v_ref, o_ref, m_sc, l_sc, acc_sc, *,
                     causal, inv_scale, mask_sub, block_q, block_k):
    """One (batch, query-tile, kv-tile) grid step (online softmax).

    q_ref:  (1, block_q, D) input dtype, unscaled
    k_ref:  (1, block_k, D) bf16
    v_ref:  (1, block_k, D) bf16
    o_ref:  (1, block_q, D) out dtype
    m_sc:   (block_q, 1) f32 running row max
    l_sc:   (block_q, 1) f32 running row sum of exp
    acc_sc: (block_q, D) f32 running (unnormalized) PV accumulator
    """
    qi = pl.program_id(1)
    ki = pl.program_id(2)
    nk = pl.num_programs(2)

    @pl.when(ki == 0)
    def _init():
        m_sc[...] = jnp.full_like(m_sc, -jnp.inf)
        l_sc[...] = jnp.zeros_like(l_sc)
        acc_sc[...] = jnp.zeros_like(acc_sc)

    def process(apply_mask):
        # Fold the softmax scale into Q here (tiny (block_q, D) VPU op, hidden
        # under the MXU); cast to bf16 for the MXU with f32 accumulation.
        q = (q_ref[0].astype(jnp.float32) * inv_scale).astype(jnp.bfloat16)
        k = k_ref[0]
        v = v_ref[0]

        # Q @ K^T: contract the last dims of both operands (no explicit K
        # transpose / relayout), single batched MXU issue, f32 accumulation.
        s = jax.lax.dot_general(
            q, k, (((1,), (1,)), ((), ())),
            preferred_element_type=jnp.float32)          # (block_q, block_k)

        if apply_mask:
            # Reference semantics: dot_products -= triu(1) * INF  before the
            # /scale; scale is already folded into Q, so subtract INF/scale.
            q_pos = qi * block_q + jax.lax.broadcasted_iota(
                jnp.int32, (block_q, block_k), 0)
            k_pos = ki * block_k + jax.lax.broadcasted_iota(
                jnp.int32, (block_q, block_k), 1)
            s = jnp.where(k_pos > q_pos, s - mask_sub, s)

        # Online (streaming) softmax update, all stats in f32.
        m_prev = m_sc[...]
        m_new = jnp.maximum(m_prev, jnp.max(s, axis=-1, keepdims=True))
        alpha = jnp.exp(m_prev - m_new)                  # rescale of old stats
        p = jnp.exp(s - m_new)                           # unnormalized probs
        l_sc[...] = alpha * l_sc[...] + jnp.sum(p, axis=-1, keepdims=True)
        acc_sc[...] = alpha * acc_sc[...] + jnp.dot(
            p.astype(jnp.bfloat16), v, preferred_element_type=jnp.float32)
        m_sc[...] = m_new

    if causal:
        q_first = qi * block_q
        q_last = q_first + (block_q - 1)
        k_first = ki * block_k
        k_last = k_first + (block_k - 1)

        on_or_below = k_first <= q_last                  # else: fully masked, skip
        crosses_diag = jnp.logical_and(on_or_below, k_last > q_first)
        fully_visible = jnp.logical_and(on_or_below, k_last <= q_first)

        @pl.when(crosses_diag)
        def _diag():
            process(apply_mask=True)

        @pl.when(fully_visible)
        def _below():
            process(apply_mask=False)
    else:
        process(apply_mask=False)

    # Finalize regardless of whether this kv tile was skipped: deferred
    # normalization of the accumulator by 1/l on the (block_q, D) tile only.
    @pl.when(ki == nk - 1)
    def _finalize():
        o_ref[0] = (acc_sc[...] *
                    pl.reciprocal(l_sc[...], approx=True)).astype(o_ref.dtype)


def attention(query, key, value, *, d_key=None, causal=False,
              block_q=256, block_k=256, out_dtype=None):
    """softmax(query @ key^T / sqrt(d_key)) @ value  (batched, 3-D inputs).

    Production note (v7x): fold heads into the batch axis before calling so
    grid axis 0 (parallel) is >= 2 wide and both TensorCores are used.
    """
    B, Tq, D = query.shape
    _, Tk, Dk = key.shape
    assert value.shape[:2] == (B, Tk) and value.shape[2] == D and Dk == D
    if d_key is None:
        d_key = D
    if causal:
        assert Tq == Tk, "causal mask in the reference assumes square attention"

    block_q = min(block_q, Tq)
    block_k = min(block_k, Tk)
    assert Tq % block_q == 0 and Tk % block_k == 0
    assert block_q % 8 == 0 and block_k % 8 == 0

    inv_scale = 1.0 / math.sqrt(float(d_key))
    # K/V are cast to bf16 once in the wrapper (they are re-read for every
    # query tile, so halving their per-tile HBM traffic pays for the one-time
    # pass).  Q is passed unscaled/uncast: scale + cast happen in the kernel.
    k_b = key.astype(jnp.bfloat16)
    v_b = value.astype(jnp.bfloat16)

    if out_dtype is None:
        out_dtype = query.dtype

    kernel = functools.partial(
        attention_kernel, causal=causal, inv_scale=inv_scale,
        mask_sub=float(INF * inv_scale), block_q=block_q, block_k=block_k)

    grid = (B, Tq // block_q, Tk // block_k)
    return pl.pallas_call(
        kernel,
        out_shape=jax.ShapeDtypeStruct((B, Tq, D), out_dtype),
        grid_spec=pltpu.PrefetchScalarGridSpec(
            num_scalar_prefetch=0,
            grid=grid,
            in_specs=[
                # Q tile: constant across the kv axis -> stays resident.
                pl.BlockSpec((1, block_q, D), lambda b, i, k: (b, i, 0)),
                # K / V tiles: streamed along the innermost kv axis.
                pl.BlockSpec((1, block_k, D), lambda b, i, k: (b, k, 0)),
                pl.BlockSpec((1, block_k, D), lambda b, i, k: (b, k, 0)),
            ],
            out_specs=pl.BlockSpec((1, block_q, D), lambda b, i, k: (b, i, 0)),
            scratch_shapes=[
                pltpu.VMEM((block_q, 1), jnp.float32),   # running max m
                pltpu.VMEM((block_q, 1), jnp.float32),   # running sum l
                pltpu.VMEM((block_q, D), jnp.float32),   # PV accumulator
            ]),
        compiler_params=pltpu.CompilerParams(
            dimension_semantics=("parallel", "parallel", "arbitrary")),
    )(query, k_b, v_b)


def attention_reference(query, key, value, *, d_key=None, causal=False):
    """Plain-JAX f32 reference matching the PyTorch module."""
    if d_key is None:
        d_key = query.shape[-1]
    scale = math.sqrt(float(d_key))
    s = jnp.einsum("bqd,bkd->bqk", query, key)
    if causal:
        Tk = key.shape[1]
        tri = jnp.triu(jnp.full((Tk, Tk), INF, jnp.float32), 1)
        s = s - tri[None]
    p = jax.nn.softmax(s / scale, axis=-1)
    return jnp.einsum("bqk,bkd->bqd", p, value)


if __name__ == "__main__":
    # Small shapes; block_q/block_k chosen below full T so the online-softmax
    # accumulation, causal block skipping and diagonal masking are exercised
    # (2 query tiles x 2 kv tiles per batch).  B=2 keeps the leading parallel
    # grid axis >= 2 wide.
    B, T, D = 2, 128, 64

    key0 = jax.random.PRNGKey(0)
    kq, kk, kv = jax.random.split(key0, 3)
    q = jax.random.normal(kq, (B, T, D), jnp.float32)
    k = jax.random.normal(kk, (B, T, D), jnp.float32)
    v = jax.random.normal(kv, (B, T, D), jnp.float32)

    # Non-causal path.
    out = jax.block_until_ready(
        attention(q, k, v, causal=False, block_q=64, block_k=64))
    ref = attention_reference(q, k, v, causal=False)
    assert out.shape == (B, T, D)
    assert jnp.allclose(out, ref, atol=3e-2, rtol=3e-2), "non-causal mismatch"

    # Causal path.
    out_c = jax.block_until_ready(
        attention(q, k, v, causal=True, block_q=64, block_k=64))
    ref_c = attention_reference(q, k, v, causal=True)
    assert jnp.allclose(out_c, ref_c, atol=3e-2, rtol=3e-2), "causal mismatch"

    print("KERNEL_OK")
</pallas_src>

<mosaic_0001>
module attributes {stable_mosaic.version = 11 : i64} {
  func.func @attention_kernel(%arg0: i32, %arg1: i32, %arg2: i32, %arg3: memref<1x64x64xf32, #tpu.memory_space<vmem>>, %arg4: memref<1x64x64xbf16, #tpu.memory_space<vmem>>, %arg5: memref<1x64x64xbf16, #tpu.memory_space<vmem>>, %arg6: memref<1x64x64xf32, #tpu.memory_space<vmem>>, %arg7: memref<64x1xf32, #tpu.memory_space<vmem>>, %arg8: memref<64x1xf32, #tpu.memory_space<vmem>>, %arg9: memref<64x64xf32, #tpu.memory_space<vmem>>) attributes {dimension_semantics = [#tpu.dimension_semantics<parallel>, #tpu.dimension_semantics<parallel>, #tpu.dimension_semantics<arbitrary>], iteration_bounds = array<i64: 2, 2, 2>, scalar_prefetch = 0 : i64, scratch_operands = 3 : i64, tpu.core_type = #tpu.core_type<tc>, window_params = [{transform_indices = @transform_0, window_bounds = array<i64: 1, 64, 64>}, {transform_indices = @transform_1, window_bounds = array<i64: 1, 64, 64>}, {transform_indices = @transform_2, window_bounds = array<i64: 1, 64, 64>}, {transform_indices = @transform_3, window_bounds = array<i64: 1, 64, 64>}]} {
    %c0_i32 = arith.constant 0 : i32
    %0 = arith.cmpi eq, %arg2, %c0_i32 : i32
    %1 = arith.extui %0 : i1 to i32
    %c0_i32_0 = arith.constant 0 : i32
    %2 = arith.cmpi ne, %1, %c0_i32_0 : i32
    scf.if %2 {
      %cst_26 = arith.constant 0xFF800000 : f32
      %39 = vector.broadcast %cst_26 : f32 to vector<64x1xf32>
      %c0_27 = arith.constant 0 : index
      %c0_28 = arith.constant 0 : index
      %40 = vector.load %arg7[%c0_27, %c0_28] : memref<64x1xf32, #tpu.memory_space<vmem>>, vector<64x1xf32>
      tpu.vector_store %arg7[%c0_27, %c0_28], %39 {strides = array<i32>} : memref<64x1xf32, #tpu.memory_space<vmem>>, vector<64x1xf32>,
      %cst_29 = arith.constant 0.000000e+00 : f32
      %41 = vector.broadcast %cst_29 : f32 to vector<64x1xf32>
      %c0_30 = arith.constant 0 : index
      %c0_31 = arith.constant 0 : index
      %42 = vector.load %arg8[%c0_30, %c0_31] : memref<64x1xf32, #tpu.memory_space<vmem>>, vector<64x1xf32>
      tpu.vector_store %arg8[%c0_30, %c0_31], %41 {strides = array<i32>} : memref<64x1xf32, #tpu.memory_space<vmem>>, vector<64x1xf32>,
      %cst_32 = arith.constant 0.000000e+00 : f32
      %43 = vector.broadcast %cst_32 : f32 to vector<64x64xf32>
      %c0_33 = arith.constant 0 : index
      %c0_34 = arith.constant 0 : index
      %44 = vector.load %arg9[%c0_33, %c0_34] : memref<64x64xf32, #tpu.memory_space<vmem>>, vector<64x64xf32>
      tpu.vector_store %arg9[%c0_33, %c0_34], %43 {strides = array<i32>} : memref<64x64xf32, #tpu.memory_space<vmem>>, vector<64x64xf32>,
    } else {
    }
    %c0 = arith.constant 0 : index
    %c0_1 = arith.constant 0 : index
    %c0_2 = arith.constant 0 : index
    %3 = vector.load %arg3[%c0, %c0_1, %c0_2] : memref<1x64x64xf32, #tpu.memory_space<vmem>>, vector<1x64x64xf32>
    %4 = vector.shape_cast %3 : vector<1x64x64xf32> to vector<64x64xf32>
    %cst = arith.constant 1.250000e-01 : f32
    %5 = vector.broadcast %cst : f32 to vector<64x64xf32>
    %6 = arith.mulf %4, %5 : vector<64x64xf32>
    %7 = arith.truncf %6 : vector<64x64xf32> to vector<64x64xbf16>
    %c0_3 = arith.constant 0 : index
    %c0_4 = arith.constant 0 : index
    %c0_5 = arith.constant 0 : index
    %8 = vector.load %arg4[%c0_3, %c0_4, %c0_5] : memref<1x64x64xbf16, #tpu.memory_space<vmem>>, vector<1x64x64xbf16>
    %9 = vector.shape_cast %8 : vector<1x64x64xbf16> to vector<64x64xbf16>
    %c0_6 = arith.constant 0 : index
    %c0_7 = arith.constant 0 : index
    %c0_8 = arith.constant 0 : index
    %10 = vector.load %arg5[%c0_6, %c0_7, %c0_8] : memref<1x64x64xbf16, #tpu.memory_space<vmem>>, vector<1x64x64xbf16>
    %11 = vector.shape_cast %10 : vector<1x64x64xbf16> to vector<64x64xbf16>
    %cst_9 = arith.constant dense<0.000000e+00> : vector<64x64xf32>
    %12 = tpu.matmul %7, %9, %cst_9 {dimension_numbers = #tpu.dot_dimension_numbers<[1], [1], [0], [0], [0, 0, 1, 0], [], []>} : vector<64x64xbf16>, vector<64x64xbf16>, vector<64x64xf32> -> vector<64x64xf32>
    %c0_10 = arith.constant 0 : index
    %c0_11 = arith.constant 0 : index
    %13 = vector.load %arg7[%c0_10, %c0_11] : memref<64x1xf32, #tpu.memory_space<vmem>>, vector<64x1xf32>
    %cst_12 = arith.constant dense<0xFF800000> : vector<64xf32>
    %14 = vector.multi_reduction <maximumf>, %12, %cst_12 [1] : vector<64x64xf32> to vector<64xf32>
    %15 = vector.shape_cast %14 : vector<64xf32> to vector<64x1xf32>
    %16 = arith.maximumf %13, %15 : vector<64x1xf32>
    %17 = arith.subf %13, %16 : vector<64x1xf32>
    %18 = math.exp %17 : vector<64x1xf32>
    %19 = vector.broadcast %16 : vector<64x1xf32> to vector<64x64xf32>
    %20 = arith.subf %12, %19 : vector<64x64xf32>
    %21 = math.exp %20 : vector<64x64xf32>
    %c0_13 = arith.constant 0 : index
    %c0_14 = arith.constant 0 : index
    %22 = vector.load %arg8[%c0_13, %c0_14] : memref<64x1xf32, #tpu.memory_space<vmem>>, vector<64x1xf32>
    %23 = arith.mulf %18, %22 : vector<64x1xf32>
    %cst_15 = arith.constant dense<0.000000e+00> : vector<64xf32>
    %24 = vector.multi_reduction <add>, %21, %cst_15 [1] : vector<64x64xf32> to vector<64xf32>
    %25 = vector.shape_cast %24 : vector<64xf32> to vector<64x1xf32>
    %26 = arith.addf %23, %25 : vector<64x1xf32>
    %c0_16 = arith.constant 0 : index
    %c0_17 = arith.constant 0 : index
    %27 = vector.load %arg8[%c0_16, %c0_17] : memref<64x1xf32, #tpu.memory_space<vmem>>, vector<64x1xf32>
    tpu.vector_store %arg8[%c0_16, %c0_17], %26 {strides = array<i32>} : memref<64x1xf32, #tpu.memory_space<vmem>>, vector<64x1xf32>,
    %c0_18 = arith.constant 0 : index
    %c0_19 = arith.constant 0 : index
    %28 = vector.load %arg9[%c0_18, %c0_19] : memref<64x64xf32, #tpu.memory_space<vmem>>, vector<64x64xf32>
    %29 = vector.broadcast %18 : vector<64x1xf32> to vector<64x64xf32>
    %30 = arith.mulf %29, %28 : vector<64x64xf32>
    %31 = arith.truncf %21 : vector<64x64xf32> to vector<64x64xbf16>
    %cst_20 = arith.constant dense<0.000000e+00> : vector<64x64xf32>
    %32 = tpu.matmul %31, %11, %cst_20 {dimension_numbers = #tpu.dot_dimension_numbers<[1], [0], [0], [1], [0, 0, 1, 1], [], []>} : vector<64x64xbf16>, vector<64x64xbf16>, vector<64x64xf32> -> vector<64x64xf32>
    %33 = arith.addf %30, %32 : vector<64x64xf32>
    %c0_21 = arith.constant 0 : index
    %c0_22 = arith.constant 0 : index
    %34 = vector.load %arg9[%c0_21, %c0_22] : memref<64x64xf32, #tpu.memory_space<vmem>>, vector<64x64xf32>
    tpu.vector_store %arg9[%c0_21, %c0_22], %33 {strides = array<i32>} : memref<64x64xf32, #tpu.memory_space<vmem>>, vector<64x64xf32>,
    %c0_23 = arith.constant 0 : index
    %c0_24 = arith.constant 0 : index
    %35 = vector.load %arg7[%c0_23, %c0_24] : memref<64x1xf32, #tpu.memory_space<vmem>>, vector<64x1xf32>
    tpu.vector_store %arg7[%c0_23, %c0_24], %16 {strides = array<i32>} : memref<64x1xf32, #tpu.memory_space<vmem>>, vector<64x1xf32>,
    %c1_i32 = arith.constant 1 : i32
    %36 = arith.cmpi eq, %arg2, %c1_i32 : i32
    %37 = arith.extui %36 : i1 to i32
    %c0_i32_25 = arith.constant 0 : i32
    %38 = arith.cmpi ne, %37, %c0_i32_25 : i32
    scf.if %38 {
      %c0_26 = arith.constant 0 : index
      %c0_27 = arith.constant 0 : index
      %39 = vector.load %arg9[%c0_26, %c0_27] : memref<64x64xf32, #tpu.memory_space<vmem>>, vector<64x64xf32>
      %c0_28 = arith.constant 0 : index
      %c0_29 = arith.constant 0 : index
      %40 = vector.load %arg8[%c0_28, %c0_29] : memref<64x1xf32, #tpu.memory_space<vmem>>, vector<64x1xf32>
      %41 = tpu.reciprocal %40 {approx = true} : vector<64x1xf32> -> vector<64x1xf32>
      %42 = vector.broadcast %41 : vector<64x1xf32> to vector<64x64xf32>
      %43 = arith.mulf %39, %42 : vector<64x64xf32>
      %c0_30 = arith.constant 0 : index
      %c0_31 = arith.constant 0 : index
      %c0_32 = arith.constant 0 : index
      %44 = vector.load %arg6[%c0_30, %c0_31, %c0_32] : memref<1x64x64xf32, #tpu.memory_space<vmem>>, vector<1x64x64xf32>
      %45 = vector.shape_cast %44 : vector<1x64x64xf32> to vector<64x64xf32>
      %46 = vector.shape_cast %43 : vector<64x64xf32> to vector<1x64x64xf32>
      tpu.vector_store %arg6[%c0_30, %c0_31, %c0_32], %46 {strides = array<i32>} : memref<1x64x64xf32, #tpu.memory_space<vmem>>, vector<1x64x64xf32>,
    } else {
    }
    return
  }
  func.func @transform_0(%arg0: i32, %arg1: i32, %arg2: i32) -> (i32, i32, i32) {
    %c0_i32 = arith.constant 0 : i32
    %c0_i32_0 = arith.constant 0 : i32
    return %arg0, %arg1, %c0_i32 : i32, i32, i32
  }
  func.func @transform_1(%arg0: i32, %arg1: i32, %arg2: i32) -> (i32, i32, i32) {
    %c0_i32 = arith.constant 0 : i32
    %c0_i32_0 = arith.constant 0 : i32
    return %arg0, %arg2, %c0_i32 : i32, i32, i32
  }
  func.func @transform_2(%arg0: i32, %arg1: i32, %arg2: i32) -> (i32, i32, i32) {
    %c0_i32 = arith.constant 0 : i32
    %c0_i32_0 = arith.constant 0 : i32
    return %arg0, %arg2, %c0_i32 : i32, i32, i32
  }
  func.func @transform_3(%arg0: i32, %arg1: i32, %arg2: i32) -> (i32, i32, i32) {
    %c0_i32 = arith.constant 0 : i32
    %c0_i32_0 = arith.constant 0 : i32
    return %arg0, %arg1, %c0_i32 : i32, i32, i32
  }
}

</mosaic_0001>

<bundles_post_ra>
// kernel: tpu_custom_call.1
= control target key start
LH: loop header
LB: loop body
LE: loop exit
PB: predicated region body
PF: predicated region fallthrough
CT: control target
= control target key end

     0   :  { %s1341_s12 = smov 0   ;;  %s1343_s13 = smov 0   ;;  %s1627_s0 = inlined_call_operand.vmem [shape: f32[2,128,64], index: 0, kind: input, shape index: {}]   ;;  %s1628_s1 = inlined_call_operand.vmem [shape: bf16[2,128,64], index: 1, kind: input, shape index: {}]   ;;  %s1629_s2 = inlined_call_operand.vmem [shape: bf16[2,128,64], index: 2, kind: input, shape index: {}]   ;;  %s1630_s3 = inlined_call_operand.vmem [shape: f32[2,128,64], index: 3, kind: output, shape index: {}]  }
   0x1   :  { %s1345_s14 = smov 0   ;;  %s1347_s15 = smov 0  }
   0x2   :  { %s1349_s16 = smov 0   ;;  %s1351_s17 = smov 0  }
   0x3   :  { %s1353_s18 = smov 0  }
   0x4 LB: > { %s25_s19 = sadd.s32 1, %s1303_s15  ;;  %s28_s20 = sadd.s32 1, %s1307_s16  ;;  %s1315_s18 = sphi %s1353_s18, %s13_s18   ;;  %s1311_s17 = sphi %s1351_s17, %s1636_s17   ;;  %s1307_s16 = sphi %s1349_s16, %s1635_s16   ;;  %s1303_s15 = sphi %s1347_s15, %s1634_s15   ;;  %s1299_s14 = sphi %s1345_s14, %s1633_s14   ;;  %s1295_s13 = sphi %s1343_s13, %s1632_s13   ;;  %s1291_s12 = sphi %s1341_s12, %s1631_s12  }
   0x5   : > { %p26_p0 = scmp.ge.s32.totalorder %s25_s19, 2  ;;  %p1056_p1 = scmp.ge.s32.totalorder %s1315_s18, 1 }
   0x6   : > { %p199_p2 = scmp.lt.s32.totalorder %s1315_s18, 9  ;;  %s32_s21 = sadd.s32 1, %s1311_s17 }
   0x7   : > { %s1638_s19 = smov (%p26_p0, %s25_s19), 0  ;;  %s1640_s20 = smov (!%p26_p0, %s28_s20), %s1307_s16 }
   0x8   : > { %p200_p3 = pnand %p1056_p1, %p199_p2  ;;  %p30_p4 = scmp.ge.s32.totalorder %s1640_s20, 2 }
   0x9   : > { %s1057_s22 = sshll.u32 (!%p200_p3), %s1295_s13, 3  ;;  %p250_p6 = scmp.lt.s32.totalorder (!%p200_p3), %s1299_s14, 1 }
   0xa   : > { %s1642_s20 = smov (%p30_p4, %s1640_s20), 0  ;;  %s1644_s21 = smov (!%p30_p4, %s32_s21), %s1311_s17 }
   0xb   : > { %p34_p5 = scmp.ge.s32.totalorder %s1644_s21, 2  ;;  %203 = sbr.rel (%p200_p3) target bundleno = 894 (0x37e), region = 32 }
   0xc   : > { %p252_p7 = scmp.lt.s32.totalorder (!%p200_p3), %s1057_s22, 15  ;;  %s1060_s23 = sshll.u32 (!%p200_p3), %s1291_s12, 3 }
   0xd   : > { %s1646_s21 = smov (%p34_p5, %s1644_s21), 0  ;;  %p262_p8 = scmp.lt.s32.totalorder (!%p200_p3), %s1060_s23, 15 }
   0xe   : > { %p1069_p9 = scmp.ne.s32.totalorder (!%p200_p3), %s1291_s12, 0 }
  0x12   : > { %s1648_s14 = smov (!%p250_p6, %s1299_s14), 1  ;;  %s1650_s22 = smov (!%p252_p7, %s1057_s22), 15 }
  0x13   : > { %s1058_s24 = sshll.u32 %s1648_s14, 4  ;;  %s1652_s23 = smov (!%p262_p8, %s1060_s23), 15  ;;  %vm294_vm0 = vcmask (!%p1069_p9), 7168   ;;  %vm311_vm1 = vcmask (!%p1069_p9), 523264   ;;  %v1317_v0 = vmov (!%p1069_p9), -inf   ;;  %v1318_v1 = vmov (!%p1069_p9), 0.0  }
  0x14   : > { %s255_s25 = sadd.s32 %s1058_s24, %s1650_s22  ;;  %s265_s6 = sadd.s32 %s1058_s24, %s1652_s23  ;;  %295 = vst.msk [vmem:[#allocation2] sm:$0xff] (!%p1069_p9), %vm294_vm0, %v1317_v0  ;;  %296 = vst.msk [vmem:[#allocation2 + $0x8] sm:$0xff] (!%p1069_p9), %vm294_vm0, %v1317_v0 }
  0x15   : > { %s1059_s26 = sshll.u32 %s255_s25, 3  ;;  %s1062_s7 = sshll.u32 %s265_s6, 2  ;;  %297 = vst.msk [vmem:[#allocation2 + $0x10] sm:$0xff] (!%p1069_p9), %vm294_vm0, %v1317_v0  ;;  %298 = vst.msk [vmem:[#allocation2 + $0x18] sm:$0xff] (!%p1069_p9), %vm294_vm0, %v1317_v0 }
  0x16   : > { %s1389_s29 = scalar_lea.vmem %s1627_s0, %s1059_s26  ;;  %s1394_s5 = scalar_lea.vmem %s1630_s3, %s1059_s26  ;;  %299 = vst.msk [vmem:[#allocation2 + $0x20] sm:$0xff] (!%p1069_p9), %vm294_vm0, %v1317_v0  ;;  %300 = vst.msk [vmem:[#allocation2 + $0x28] sm:$0xff] (!%p1069_p9), %vm294_vm0, %v1317_v0 }
  0x17   : > { %s1399_s10 = scalar_lea.vmem %s1628_s1, %s1062_s7  ;;  %s1404_s14 = scalar_lea.vmem %s1629_s2, %s1062_s7  ;;  %301 = vst.msk [vmem:[#allocation2 + $0x30] sm:$0xff] (!%p1069_p9), %vm294_vm0, %v1317_v0  ;;  %302 = vst.msk [vmem:[#allocation2 + $0x38] sm:$0xff] (!%p1069_p9), %vm294_vm0, %v1317_v0 }
  0x18   : > { %293 = sbr.rel (%p1069_p9) target bundleno = 32 (0x20), region = 36  ;;  %303 = vst.msk [vmem:[#allocation3] sm:$0xff] (!%p1069_p9), %vm294_vm0, %v1318_v1  ;;  %304 = vst.msk [vmem:[#allocation3 + $0x8] sm:$0xff] (!%p1069_p9), %vm294_vm0, %v1318_v1 }
  0x19   : > { %305 = vst.msk [vmem:[#allocation3 + $0x10] sm:$0xff] (!%p1069_p9), %vm294_vm0, %v1318_v1  ;;  %306 = vst.msk [vmem:[#allocation3 + $0x18] sm:$0xff] (!%p1069_p9), %vm294_vm0, %v1318_v1 }
  0x1a   : > { %307 = vst.msk [vmem:[#allocation3 + $0x20] sm:$0xff] (!%p1069_p9), %vm294_vm0, %v1318_v1  ;;  %308 = vst.msk [vmem:[#allocation3 + $0x28] sm:$0xff] (!%p1069_p9), %vm294_vm0, %v1318_v1 }
  0x1b   : > { %309 = vst.msk [vmem:[#allocation3 + $0x30] sm:$0xff] (!%p1069_p9), %vm294_vm0, %v1318_v1  ;;  %310 = vst.msk [vmem:[#allocation3 + $0x38] sm:$0xff] (!%p1069_p9), %vm294_vm0, %v1318_v1 }
  0x1c   : > { %312 = vst.msk [vmem:[#allocation4] sm:$0xff] (!%p1069_p9), %vm311_vm1, %v1318_v1  ;;  %313 = vst.msk [vmem:[#allocation4 + $0x8] sm:$0xff] (!%p1069_p9), %vm311_vm1, %v1318_v1 }
  0x1d   : > { %314 = vst.msk [vmem:[#allocation4 + $0x10] sm:$0xff] (!%p1069_p9), %vm311_vm1, %v1318_v1  ;;  %315 = vst.msk [vmem:[#allocation4 + $0x18] sm:$0xff] (!%p1069_p9), %vm311_vm1, %v1318_v1 }
  0x1e   : > { %316 = vst.msk [vmem:[#allocation4 + $0x20] sm:$0xff] (!%p1069_p9), %vm311_vm1, %v1318_v1  ;;  %317 = vst.msk [vmem:[#allocation4 + $0x28] sm:$0xff] (!%p1069_p9), %vm311_vm1, %v1318_v1 }
  0x1f   : > { %318 = vst.msk [vmem:[#allocation4 + $0x30] sm:$0xff] %vm311_vm1, %v1318_v1  ;;  %319 = vst.msk [vmem:[#allocation4 + $0x38] sm:$0xff] %vm311_vm1, %v1318_v1 }
  0x20 PF: > { %v1203_v2 = vld [vmem:[%s1399_s10] sm:$0xff]   ;;  %vm376_vm2 = vcmask 523264   ;;  %v1204_v3 = vld [vmem:[%s1399_s10 + $0x8] sm:$0xff]   ;;  %v1205_v10 = vld [vmem:[%s1399_s10 + $0x10] sm:$0xff]   ;;  %v1319_v46 = vmov 0   ;;  %vm642_vm3 = vcmask 7168  }
  0x21   : > { %1137 = vmatprep.subr.msk.bf16.mxu0 %vm376_vm2, %v1203_v2  ;;  %v390_v4 = vsel %vm376_vm2, %v1203_v2, 0  ;;  %v320_v5 = vld [vmem:[%s1389_s29] sm:$0xff]  ;;  %v321_v6 = vld [vmem:[%s1389_s29 + $0x8] sm:$0xff]  ;;  %v393_v9 = vsel %vm376_vm2, %v1204_v3, 0  ;;  %v396_v12 = vsel %vm376_vm2, %v1205_v10, 0  ;;  %v1206_v13 = vld [vmem:[%s1399_s10 + $0x18] sm:$0xff]   ;;  %1201 = vset.pattern.permute.xlu0 %v1319_v46 }
  0x22   : > { %1106 = vmatpush3.bf16.xpose.msra.mxu0 %v390_v4  ;;  %v328_v7 = vmul.f32 0.125, %v320_v5  ;;  %v329_v8 = vmul.f32 0.125, %v321_v6  ;;  %v322_v14 = vld [vmem:[%s1389_s29 + $0x10] sm:$0xff]  ;;  %v323_v15 = vld [vmem:[%s1389_s29 + $0x18] sm:$0xff]  ;;  %v399_v16 = vsel %vm376_vm2, %v1206_v13, 0  ;;  %v324_v17 = vld [vmem:[%s1389_s29 + $0x20] sm:$0xff]  ;;  %1202 = vset.pattern.permute.xlu1 %v1319_v46 }
  0x23   : > { %1138 = vmatprep.subr.msk.bf16.mxu0 %vm376_vm2, %v1204_v3  ;;  %v325_v18 = vld [vmem:[%s1389_s29 + $0x28] sm:$0xff]  ;;  %v330_v19 = vmul.f32 0.125, %v322_v14  ;;  %v331_v20 = vmul.f32 0.125, %v323_v15  ;;  %v332_v21 = vmul.f32 0.125, %v324_v17  ;;  %v326_v25 = vld [vmem:[%s1389_s29 + $0x30] sm:$0xff]  ;;  %v327_v26 = vld [vmem:[%s1389_s29 + $0x38] sm:$0xff] }
  0x24   : > { %v336_v11 = vpack.c.bf16 %v329_v8, %v328_v7  ;;  %v333_v22 = vmul.f32 0.125, %v325_v18  ;;  %v334_v27 = vmul.f32 0.125, %v326_v25  ;;  %v335_v28 = vmul.f32 0.125, %v327_v26  ;;  %v468_v47 = vld [vmem:[#allocation2 + $0x10] sm:$0xff]  ;;  %v466_v48 = vld [vmem:[#allocation2] sm:$0xff]  ;;  %v469_v53 = vld [vmem:[#allocation2 + $0x18] sm:$0xff] }
  0x25   : > { %v337_v23 = vpack.c.bf16 %v331_v20, %v330_v19  ;;  %v467_v54 = vld [vmem:[#allocation2 + $0x8] sm:$0xff]  ;;  %v470_v62 = vld [vmem:[#allocation2 + $0x20] sm:$0xff]  ;;  %v1491_v4 = vld [vmem:[#allocation2 + $0x30] sm:$0xff]  ;;  %p1086_p10 = scmp.ne.s32.totalorder %s1291_s12, 1 }
  0x26   : > { %1113 = vmatprep.mubr.msk.bf16.mxu0 %vm376_vm2, %v336_v11  ;;  %v338_v24 = vpack.c.bf16 %v333_v22, %v332_v21  ;;  %v339_v29 = vpack.c.bf16 %v335_v28, %v334_v27  ;;  %v471_v1 = vld [vmem:[#allocation2 + $0x28] sm:$0xff]  ;;  %v1207_v5 = vld [vmem:[%s1404_s14] sm:$0xff]   ;;  %v1209_v21 = vld [vmem:[%s1404_s14 + $0x10] sm:$0xff]  }
  0x27   : > { %1121 = vmatprep.subr.bf16.mxu1 %v1207_v5  ;;  %v1210_v25 = vld [vmem:[%s1404_s14 + $0x18] sm:$0xff]  }
  0x28   : > { %1122 = vmatpush3.bf16.msra.mxu1 %v1207_v5 }
  0x2a   : > { %1108 = vmatpush3.bf16.xpose.msra.mxu0 %v393_v9  ;;  %v1495_v9 = vld [vmem:[#allocation2 + $0x38] sm:$0xff] }
  0x2b   : > { %1139 = vmatprep.subr.msk.bf16.mxu0 %vm376_vm2, %v1205_v10 }
  0x32   : > { %1110 = vmatpush3.bf16.xpose.msra.mxu0 %v396_v12 }
  0x33   : > { %1140 = vmatprep.subr.msk.bf16.mxu0 %vm376_vm2, %v1206_v13  ;;  %v1208_v13 = vld [vmem:[%s1404_s14 + $0x8] sm:$0xff]  }
  0x34   : > { %1123 = vmatprep.subr.bf16.mxu1 %v1208_v13 }
  0x35   : > { %1124 = vmatpush3.bf16.msra.mxu1 %v1208_v13 }
  0x36   : > { %1125 = vmatprep.subr.bf16.mxu1 %v1209_v21 }
  0x39   : > { %1126 = vmatpush3.bf16.msra.mxu1 %v1209_v21 }
  0x3a   : > { %1112 = vmatpush3.bf16.xpose.msra.mxu0 %v399_v16  ;;  %1127 = vmatprep.subr.bf16.mxu1 %v1210_v25 }
  0x3d   : > { %1128 = vmatpush3.bf16.msra.mxu1 %v1210_v25  ;;  %v596_v25 = vld [vmem:[#allocation3 + $0x10] sm:$0xff] }
  0x41   : > { %1114 = vmatmul.mubr.msk.bf16.vlgmr.msra.gmra.mrb[0].mxu0 %vm376_vm2, %v337_v23 }
  0x42   : > { %1117 = vmatprep.mubr.msk.bf16.mxu0 %vm376_vm2, %v338_v24 }
  0x49   : > { %1118 = vmatmul.mubr.msk.bf16.gmra.mrb[4].mxu0 %vm376_vm2, %v339_v29 }
 0x114   : > { %v1455_v30 = vpop.f32.mrb[0].mxu0 }
 0x115   : > { %v1457_v31 = vpop.f32.mrb[1].mxu0  ;;  %v480_v32 = vsel %vm376_vm2, %v1455_v30, -inf }
 0x116   : > { %481 = vmax.xlane.f32.xlu1 %v480_v32  ;;  %v1461_v33 = vpop.f32.mrb[2].mxu0  ;;  %v474_v34 = vsel %vm376_vm2, %v1457_v31, -inf }
 0x117   : > { %475 = vmax.xlane.f32.xlu0 %v474_v34  ;;  %v1465_v35 = vpop.f32.mrb[3].mxu0  ;;  %v483_v36 = vsel %vm376_vm2, %v1461_v33, -inf }
 0x118   : > { %v477_v37 = vsel %vm376_vm2, %v1465_v35, -inf }
 0x11a   : > { %484 = vmax.xlane.f32.xlu1 %v483_v36 }
 0x11b   : > { %478 = vmax.xlane.f32.xlu0 %v477_v37 }
 0x11c   : > { %v1471_v38 = vpop.f32.mrb[4].mxu0 }
 0x11d   : > { %v1473_v39 = vpop.f32.mrb[5].mxu0  ;;  %v492_v44 = vsel %vm376_vm2, %v1471_v38, -inf }
 0x11e   : > { %v1475_v40 = vpop.f32.mrb[6].mxu0  ;;  %v486_v41 = vsel %vm376_vm2, %v1473_v39, -inf }
 0x11f   : > { %487 = vmax.xlane.f32.xlu0 %v486_v41  ;;  %v1479_v42 = vpop.f32.mrb[7].mxu0  ;;  %v495_v45 = vsel %vm376_vm2, %v1475_v40, -inf }
 0x120   : > { %v489_v43 = vsel %vm376_vm2, %v1479_v42, -inf }
 0x121   : > { %490 = vmax.xlane.f32.xlu1 %v489_v43 }
 0x123   : > { %493 = vmax.xlane.f32.xlu0 %v492_v44 }
 0x125   : > { %496 = vmax.xlane.f32.xlu1 %v495_v45 }
 0x1a3   : > { %v482_v49 = vpop.xlane.xlu1 %481 }
 0x1a4   : > { %v500_v50 = vmax.f32 %v468_v47, %v482_v49  ;;  %v476_v51 = vpop.xlane.xlu0 %475 }
 0x1a5   : > { %v498_v52 = vmax.f32 %v466_v48, %v476_v51 }
 0x1a6   : > { %830 = vst.msk [vmem:[#allocation2 + $0x10] sm:$0xff] %vm642_vm3, %v500_v50  ;;  %542 = vperm.xlu1 %1202, %v500_v50   ;;  %v508_v7 = vsub.f32 %v468_v47, %v500_v50 }
 0x1a7   : > { %v506_v55 = vsub.f32 %v466_v48, %v498_v52  ;;  %828 = vst.msk [vmem:[#allocation2] sm:$0xff] %vm642_vm3, %v498_v52  ;;  %v485_v56 = vpop.xlane.xlu1 %484  ;;  %532 = vperm.xlu0 %1201, %v498_v52  }
 0x1a8   : > { %v501_v57 = vmax.f32 %v469_v53, %v485_v56  ;;  %v479_v58 = vpop.xlane.xlu0 %478  ;;  %v518_v17 = vmul.f32 1.442695, %v508_v7 }
 0x1a9   : > { %v514_v59 = vmul.f32 1.442695, %v506_v55  ;;  %v499_v60 = vmax.f32 %v467_v54, %v479_v58 }
 0x1aa   : > { %v509_v61 = vsub.f32 %v469_v53, %v501_v57  ;;  %831 = vst.msk [vmem:[#allocation2 + $0x18] sm:$0xff] %vm642_vm3, %v501_v57  ;;  %547 = vperm.xlu1 %1202, %v501_v57  }
 0x1ab   : > { %1211 = vpow2.f32 %v514_v59  ;;  %829 = vst.msk [vmem:[#allocation2 + $0x8] sm:$0xff] %vm642_vm3, %v499_v60  ;;  %v507_v18 = vsub.f32 %v467_v54, %v499_v60 }
 0x1ac   : > { %v520_v63 = vmul.f32 1.442695, %v509_v61  ;;  %v488_v0 = vpop.xlane.xlu0 %487 }
 0x1ad   : > { %v502_v2 = vmax.f32 %v470_v62, %v488_v0  ;;  %v516_v23 = vmul.f32 1.442695, %v507_v18 }
 0x1ae   : > { %1213 = vpow2.f32 %v520_v63  ;;  %537 = vperm.xlu1 %1202, %v499_v60   ;;  %v491_v3 = vpop.xlane.xlu1 %490 }
 0x1af   : > { %832 = vst.msk [vmem:[#allocation2 + $0x20] sm:$0xff] %vm642_vm3, %v502_v2  ;;  %v503_v6 = vmax.f32 %v471_v1, %v491_v3  ;;  %v510_v24 = vsub.f32 %v470_v62, %v502_v2 }
 0x1b0   : > { %v494_v8 = vpop.xlane.xlu0 %493 }
 0x1b1   : > { %v511_v10 = vsub.f32 %v471_v1, %v503_v6  ;;  %833 = vst.msk [vmem:[#allocation2 + $0x28] sm:$0xff] %vm642_vm3, %v503_v6  ;;  %v1499_v11 = vmax.f32 %v1491_v4, %v494_v8  ;;  %v522_v26 = vmul.f32 1.442695, %v510_v24 }
 0x1b2   : > { %v497_v12 = vpop.xlane.xlu1 %496 }
 0x1b3   : > { %v524_v14 = vmul.f32 1.442695, %v511_v10  ;;  %v512_v15 = vsub.f32 %v1491_v4, %v1499_v11  ;;  %834 = vst.msk [vmem:[#allocation2 + $0x30] sm:$0xff] %vm642_vm3, %v1499_v11  ;;  %v1507_v16 = vmax.f32 %v1495_v9, %v497_v12  ;;  %562 = vperm.xlu1 %1202, %v1499_v11  }
 0x1b5   : > { %v1510_v19 = vpop.eup %1211  ;;  %1215 = vpow2.f32 %v524_v14  ;;  %v513_v20 = vsub.f32 %v1495_v9, %v1507_v16  ;;  %835 = vst.msk [vmem:[#allocation2 + $0x38] sm:$0xff] %vm642_vm3, %v1507_v16 }
 0x1b6   : > { %661 = vperm.xlu0 %1201, %v1510_v19   ;;  %1217 = vpow2.f32 %v518_v17  ;;  %v526_v17 = vmul.f32 1.442695, %v512_v15 }
 0x1b7   : > { %552 = vperm.xlu1 %1202, %v502_v2   ;;  %1219 = vpow2.f32 %v516_v23 }
 0x1b8   : > { %v1518_v22 = vpop.eup %1213  ;;  %1221 = vpow2.f32 %v522_v26 }
 0x1ba   : > { %676 = vperm.xlu0 %1201, %v1518_v22  }
 0x1bb   : > { %557 = vperm.xlu1 %1202, %v503_v6  }
 0x1bf   : > { %v1522_v27 = vpop.eup %1215  ;;  %567 = vperm.xlu1 %1202, %v1507_v16  }
 0x1c0   : > { %686 = vperm.xlu0 %1201, %v1522_v27   ;;  %v1526_v28 = vpop.eup %1217 }
 0x1c1   : > { %v1529_v29 = vpop.eup %1219 }
 0x1c2   : > { %v1532_v32 = vpop.eup %1221 }
 0x1c3   : > { %671 = vperm.xlu1 %1202, %v1526_v28  }
 0x1c7   : > { %666 = vperm.xlu1 %1202, %v1529_v29  }
 0x1cb   : > { %681 = vperm.xlu1 %1202, %v1532_v32  }
 0x225   : > { %v543_v34 = vpop.permute.xlu1 %542 }
 0x226   : > { %v572_v36 = vsub.f32 %v1455_v30, %v543_v34  ;;  %v533_v37 = vpop.permute.xlu0 %532  ;;  %v594_v34 = vld [vmem:[#allocation3] sm:$0xff] }
 0x227   : > { %v570_v41 = vsub.f32 %v1457_v31, %v533_v37  ;;  %v602_v4 = vmul.f32 %v1510_v19, %v594_v34  ;;  %v600_v19 = vld [vmem:[#allocation3 + $0x30] sm:$0xff] }
 0x228   : > { %v582_v43 = vmul.f32 1.442695, %v572_v36  ;;  %v604_v36 = vmul.f32 %v1526_v28, %v596_v25 }
 0x229   : > { %v578_v44 = vmul.f32 1.442695, %v570_v41  ;;  %v548_v45 = vpop.permute.xlu1 %547  ;;  %v597_v41 = vld [vmem:[#allocation3 + $0x18] sm:$0xff] }
 0x22a   : > { %1223 = vpow2.f32 %v582_v43  ;;  %v573_v46 = vsub.f32 %v1461_v33, %v548_v45  ;;  %v595_v45 = vld [vmem:[#allocation3 + $0x8] sm:$0xff] }
 0x22b   : > { %1225 = vpow2.f32 %v578_v44  ;;  %v605_v44 = vmul.f32 %v1518_v22, %v597_v41 }
 0x22c   : > { %v584_v47 = vmul.f32 1.442695, %v573_v46 }
 0x22d   : > { %v538_v48 = vpop.permute.xlu1 %537 }
 0x22e   : > { %1227 = vpow2.f32 %v584_v47  ;;  %v571_v49 = vsub.f32 %v1465_v35, %v538_v48  ;;  %v603_v48 = vmul.f32 %v1529_v29, %v595_v45  ;;  %v601_v29 = vld [vmem:[#allocation3 + $0x38] sm:$0xff] }
 0x230   : > { %v580_v50 = vmul.f32 1.442695, %v571_v49 }
 0x232   : > { %1229 = vpow2.f32 %v580_v50  ;;  %v563_v51 = vpop.permute.xlu1 %562 }
 0x233   : > { %v576_v30 = vsub.f32 %v1471_v38, %v563_v51 }
 0x234   : > { %v1224_v52 = vpop.eup %1223 }
 0x235   : > { %v1226_v53 = vpop.eup %1225  ;;  %v590_v31 = vmul.f32 1.442695, %v576_v30  ;;  %v616_v54 = vsel %vm376_vm2, %v1224_v52, 0.0  ;;  %v662_v16 = vpop.permute.xlu0 %661  ;;  %v598_v30 = vld [vmem:[#allocation3 + $0x20] sm:$0xff] }
 0x236   : > { %617 = vadd.xlane.f32.xlu0 %v616_v54  ;;  %v553_v55 = vpop.permute.xlu1 %552  ;;  %v610_v33 = vsel %vm376_vm2, %v1226_v53, 0.0  ;;  %v606_v22 = vmul.f32 %v1532_v32, %v598_v30  ;;  %v654_v32 = vld [vmem:[#allocation4 + $0x18] sm:$0xff] }
 0x237   : > { %1231 = vpow2.f32 %v590_v31  ;;  %v574_v56 = vsub.f32 %v1473_v39, %v553_v55  ;;  %611 = vadd.xlane.f32.xlu1 %v610_v33  ;;  %v599_v33 = vld [vmem:[#allocation3 + $0x28] sm:$0xff] }
 0x238   : > { %v1228_v57 = vpop.eup %1227 }
 0x239   : > { %v586_v35 = vmul.f32 1.442695, %v574_v56  ;;  %v619_v58 = vsel %vm376_vm2, %v1228_v57, 0.0  ;;  %v708_v59 = vpack.c.bf16 %v1228_v57, %v1224_v52  ;;  %v677_v23 = vpop.permute.xlu0 %676  ;;  %v607_v57 = vmul.f32 %v1522_v27, %v599_v33 }
 0x23a   : > { %v558_v60 = vpop.permute.xlu1 %557 }
 0x23b   : > { %1233 = vpow2.f32 %v586_v35  ;;  %v575_v38 = vsub.f32 %v1479_v42, %v558_v60  ;;  %620 = vadd.xlane.f32.xlu1 %v619_v58  ;;  %v651_v60 = vld [vmem:[#allocation4] sm:$0xff] }
 0x23c   : > { %v1230_v61 = vpop.eup %1229 }
 0x23d   : > { %v588_v62 = vmul.f32 1.442695, %v575_v38  ;;  %v613_v63 = vsel %vm376_vm2, %v1230_v61, 0.0  ;;  %v707_v0 = vpack.c.bf16 %v1230_v61, %v1226_v53  ;;  %v652_v61 = vld [vmem:[#allocation4 + $0x8] sm:$0xff] }
 0x23e   : > { %614 = vadd.xlane.f32.xlu0 %v613_v63  ;;  %v568_v1 = vpop.permute.xlu1 %567 }
 0x23f   : > { %1235 = vpow2.f32 %v588_v62  ;;  %v577_v39 = vsub.f32 %v1475_v40, %v568_v1  ;;  %1129 = vmatprep.mubr.msk.bf16.mxu1 %vm376_vm2, %v707_v0  ;;  %v528_v40 = vmul.f32 1.442695, %v513_v20  ;;  %v1561_v24 = vpop.permute.xlu0 %686  ;;  %v699_v62 = vmul.f32 %v662_v16, %v651_v60 }
 0x240   : > { %1130 = vmatmul.mubr.msk.bf16.vlgmr.msra.gmra.mrb[0].mxu1 %vm376_vm2, %v708_v59  ;;  %v653_v59 = vld [vmem:[#allocation4 + $0x10] sm:$0xff]  ;;  %v702_v0 = vmul.f32 %v677_v23, %v654_v32 }
 0x241   : > { %v1232_v2 = vpop.eup %1231  ;;  %v592_v3 = vmul.f32 1.442695, %v577_v39 }
 0x242   : > { %v628_v5 = vsel %vm376_vm2, %v1232_v2, 0.0  ;;  %v672_v9 = vpop.permute.xlu1 %671 }
 0x243   : > { %1237 = vpow2.f32 %v592_v3  ;;  %629 = vadd.xlane.f32.xlu0 %v628_v5  ;;  %v701_v38 = vmul.f32 %v672_v9, %v653_v59 }
 0x244   : > { %1239 = vpow2.f32 %v528_v40  ;;  %v658_v40 = vld [vmem:[#allocation4 + $0x38] sm:$0xff] }
 0x245   : > { %v1234_v42 = vpop.eup %1233  ;;  %1241 = vpow2.f32 %v526_v17 }
 0x246   : > { %v622_v6 = vsel %vm376_vm2, %v1234_v42, 0.0  ;;  %v667_v20 = vpop.permute.xlu1 %666 }
 0x247   : > { %623 = vadd.xlane.f32.xlu0 %v622_v6 }
 0x249   : > { %v1236_v7 = vpop.eup %1235 }
 0x24a   : > { %v709_v8 = vpack.c.bf16 %v1236_v7, %v1234_v42  ;;  %v625_v14 = vsel %vm376_vm2, %v1236_v7, 0.0  ;;  %v1563_v26 = vpop.permute.xlu1 %681  ;;  %v657_v7 = vld [vmem:[#allocation4 + $0x30] sm:$0xff] }
 0x24c   : > { %1133 = vmatprep.mubr.msk.bf16.mxu1 %vm376_vm2, %v709_v8 }
 0x24d   : > { %v1238_v10 = vpop.eup %1237 }
 0x24e   : > { %v631_v12 = vsel %vm376_vm2, %v1238_v10, 0.0  ;;  %v710_v13 = vpack.c.bf16 %v1238_v10, %v1232_v2  ;;  %v1240_v18 = vpop.eup %1239  ;;  %v700_v2 = vmul.f32 %v667_v20, %v652_v61  ;;  %v655_v10 = vld [vmem:[#allocation4 + $0x20] sm:$0xff] }
 0x24f   : > { %632 = vadd.xlane.f32.xlu1 %v631_v12  ;;  %v1242_v21 = vpop.eup %1241  ;;  %v609_v54 = vmul.f32 %v1240_v18, %v601_v29  ;;  %v703_v17 = vmul.f32 %v1563_v26, %v655_v10 }
 0x250   : > { %1134 = vmatmul.mubr.msk.bf16.gmra.mrb[4].mxu1 %vm376_vm2, %v710_v13  ;;  %v608_v50 = vmul.f32 %v1242_v21, %v600_v19  ;;  %v656_v13 = vld [vmem:[#allocation4 + $0x28] sm:$0xff] }
 0x251   : > { %v704_v20 = vmul.f32 %v1561_v24, %v656_v13  ;;  %v1320_v24 = vmov (!%p1086_p10), 0  }
 0x253   : > { %626 = vadd.xlane.f32.xlu1 %v625_v14 }
 0x25d   : > { %696 = vperm.xlu0 %1201, %v1240_v18  }
 0x261   : > { %1243 = vset.pattern.permute.xlu0 (!%p1086_p10), %v1320_v24 }
 0x264   : > { %691 = vperm.xlu1 %1202, %v1242_v21  }
 0x268   : > { %1244 = vset.pattern.permute.xlu1 (!%p1086_p10), %v1320_v24 }
 0x2c3   : > { %v618_v37 = vpop.xlane.xlu0 %617 }
 0x2c4   : > { %v636_v11 = vadd.f32 %v618_v37, %v604_v36  ;;  %v612_v15 = vpop.xlane.xlu1 %611 }
 0x2c5   : > { %v634_v43 = vadd.f32 %v612_v15, %v602_v4 }
 0x2c6   : > { %645 = vst.msk [vmem:[#allocation3 + $0x10] sm:$0xff] %vm642_vm3, %v636_v11 }
 0x2c7   : > { %643 = vst.msk [vmem:[#allocation3] sm:$0xff] %vm642_vm3, %v634_v43 }
 0x2c8   : > { %v621_v46 = vpop.xlane.xlu1 %620 }
 0x2c9   : > { %v637_v47 = vadd.f32 %v621_v46, %v605_v44 }
 0x2cb   : > { %646 = vst.msk [vmem:[#allocation3 + $0x18] sm:$0xff] %vm642_vm3, %v637_v47  ;;  %v615_v28 = vpop.xlane.xlu0 %614 }
 0x2cc   : > { %v635_v49 = vadd.f32 %v615_v28, %v603_v48 }
 0x2cd   : > { %v850_v26 = vld [vmem:[#allocation3 + $0x10] sm:$0xff] (!%p1086_p10) }
 0x2ce   : > { %644 = vst.msk [vmem:[#allocation3 + $0x8] sm:$0xff] %vm642_vm3, %v635_v49  ;;  %v848_v4 = vld [vmem:[#allocation3] sm:$0xff] (!%p1086_p10)  ;;  %1245 = vrcp.f32 (!%p1086_p10), %v850_v26 }
 0x2cf   : > { %1247 = vrcp.f32 (!%p1086_p10), %v848_v4 }
 0x2d0   : > { %v630_v51 = vpop.xlane.xlu0 %629 }
 0x2d1   : > { %v640_v52 = vadd.f32 %v630_v51, %v608_v50 }
 0x2d2   : > { %v851_v11 = vld [vmem:[#allocation3 + $0x18] sm:$0xff] (!%p1086_p10) }
 0x2d3   : > { %649 = vst.msk [vmem:[#allocation3 + $0x30] sm:$0xff] %vm642_vm3, %v640_v52  ;;  %1249 = vrcp.f32 (!%p1086_p10), %v851_v11 }
 0x2d4   : > { %v624_v53 = vpop.xlane.xlu0 %623 }
 0x2d5   : > { %v638_v31 = vadd.f32 %v624_v53, %v606_v22  ;;  %v849_v15 = vld [vmem:[#allocation3 + $0x8] sm:$0xff] (!%p1086_p10) }
 0x2d6   : > { %1251 = vrcp.f32 (!%p1086_p10), %v849_v15 }
 0x2d7   : > { %647 = vst.msk [vmem:[#allocation3 + $0x20] sm:$0xff] %vm642_vm3, %v638_v31 }
 0x2d8   : > { %v1246_v46 = vpop.eup (!%p1086_p10), %1245 }
 0x2d9   : > { %v1248_v47 = vpop.eup (!%p1086_p10), %1247  ;;  %876 = vperm.xlu1 (!%p1086_p10), %1244, %v1246_v46  }
 0x2da   : > { %v854_v45 = vld [vmem:[#allocation3 + $0x30] sm:$0xff] (!%p1086_p10)  ;;  %866 = vperm.xlu0 (!%p1086_p10), %1243, %v1248_v47  }
 0x2dc   : > { %v633_v55 = vpop.xlane.xlu1 %632  ;;  %v697_v12 = vpop.permute.xlu0 %696 }
 0x2dd   : > { %v641_v56 = vadd.f32 %v633_v55, %v609_v54  ;;  %v706_v21 = vmul.f32 %v697_v12, %v658_v40  ;;  %v1250_v48 = vpop.eup (!%p1086_p10), %1249 }
 0x2de   : > { %v852_v43 = vld [vmem:[#allocation3 + $0x20] sm:$0xff] (!%p1086_p10)  ;;  %881 = vperm.xlu1 (!%p1086_p10), %1244, %v1250_v48  }
 0x2df   : > { %650 = vst.msk [vmem:[#allocation3 + $0x38] sm:$0xff] %vm642_vm3, %v641_v56 }
 0x2e0   : > { %v627_v35 = vpop.xlane.xlu1 %626  ;;  %v1252_v28 = vpop.eup (!%p1086_p10), %1251 }
 0x2e1   : > { %v639_v58 = vadd.f32 %v627_v35, %v607_v57  ;;  %871 = vperm.xlu0 (!%p1086_p10), %1243, %v1252_v28  }
 0x2e3   : > { %648 = vst.msk [vmem:[#allocation3 + $0x28] sm:$0xff] %vm642_vm3, %v639_v58 }
 0x2e4   : > { %v692_v8 = vpop.permute.xlu1 %691 }
 0x2e5   : > { %v705_v14 = vmul.f32 %v692_v8, %v657_v7 }
 0x2e6   : > { %v855_v44 = vld [vmem:[#allocation3 + $0x38] sm:$0xff] (!%p1086_p10) }
 0x2ea   : > { %v853_v41 = vld [vmem:[#allocation3 + $0x28] sm:$0xff] (!%p1086_p10) }
 0x2eb   : > { %1253 = vrcp.f32 (!%p1086_p10), %v853_v41 }
 0x2ec   : > { %1255 = vrcp.f32 (!%p1086_p10), %v852_v43 }
 0x2ed   : > { %1257 = vrcp.f32 (!%p1086_p10), %v855_v44 }
 0x2ee   : > { %1259 = vrcp.f32 (!%p1086_p10), %v854_v45 }
 0x2f5   : > { %v1254_v49 = vpop.eup (!%p1086_p10), %1253 }
 0x2f6   : > { %v1256_v19 = vpop.eup (!%p1086_p10), %1255  ;;  %891 = vperm.xlu1 (!%p1086_p10), %1244, %v1254_v49  }
 0x2f7   : > { %v1258_v50 = vpop.eup (!%p1086_p10), %1257  ;;  %886 = vperm.xlu0 (!%p1086_p10), %1243, %v1256_v19  }
 0x2f8   : > { %v1260_v51 = vpop.eup (!%p1086_p10), %1259 }
 0x2fa   : > { %901 = vperm.xlu1 (!%p1086_p10), %1244, %v1258_v50  }
 0x2fb   : > { %896 = vperm.xlu0 (!%p1086_p10), %1243, %v1260_v51  }
 0x313   : > { %v1131_v63 = vpop.f32.mrb[0].mxu1 }
 0x314   : > { %v814_v1 = vadd.f32 %v1131_v63, %v701_v38  ;;  %v781_v39 = vpop.f32.mrb[1].mxu1 }
 0x315   : > { %v812_v3 = vadd.f32 %v781_v39, %v699_v62  ;;  %v1132_v5 = vpop.f32.mrb[2].mxu1 }
 0x316   : > { %822 = vst.msk [vmem:[#allocation4 + $0x10] sm:$0xff] %vm376_vm2, %v814_v1  ;;  %v815_v27 = vadd.f32 %v1132_v5, %v702_v0  ;;  %v784_v42 = vpop.f32.mrb[3].mxu1 }
 0x317   : > { %820 = vst.msk [vmem:[#allocation4] sm:$0xff] %vm376_vm2, %v812_v3  ;;  %v813_v6 = vadd.f32 %v784_v42, %v700_v2 }
 0x318   : > { %823 = vst.msk [vmem:[#allocation4 + $0x18] sm:$0xff] %vm376_vm2, %v815_v27 }
 0x319   : > { %821 = vst.msk [vmem:[#allocation4 + $0x8] sm:$0xff] %vm376_vm2, %v813_v6 }
 0x31d   : > { %v842_v30 = vld [vmem:[#allocation4 + $0x10] sm:$0xff] (!%p1086_p10) }
 0x31e   : > { %v840_v52 = vld [vmem:[#allocation4] sm:$0xff] (!%p1086_p10) }
 0x31f   : > { %v843_v54 = vld [vmem:[#allocation4 + $0x18] sm:$0xff] (!%p1086_p10) }
 0x320   : > { %v841_v55 = vld [vmem:[#allocation4 + $0x8] sm:$0xff] (!%p1086_p10) }
 0x323   : > { %v1135_v18 = vpop.f32.mrb[4].mxu1  ;;  %839 = sbr.rel (%p1086_p10) target bundleno = 894 (0x37e), region = 40 }
 0x324   : > { %v818_v9 = vadd.f32 %v1135_v18, %v705_v14  ;;  %v797_v16 = vpop.f32.mrb[5].mxu1 }
 0x325   : > { %v816_v23 = vadd.f32 %v797_v16, %v703_v17  ;;  %v1136_v25 = vpop.f32.mrb[6].mxu1 }
 0x326   : > { %826 = vst.msk [vmem:[#allocation4 + $0x30] sm:$0xff] %vm376_vm2, %v818_v9  ;;  %v819_v34 = vadd.f32 %v1136_v25, %v706_v21  ;;  %v800_v36 = vpop.f32.mrb[7].mxu1 }
 0x327   : > { %824 = vst.msk [vmem:[#allocation4 + $0x20] sm:$0xff] %vm376_vm2, %v816_v23  ;;  %v817_v37 = vadd.f32 %v800_v36, %v704_v20 }
 0x328   : > { %827 = vst.msk [vmem:[#allocation4 + $0x38] sm:$0xff] %vm376_vm2, %v819_v34 }
 0x329   : > { %825 = vst.msk [vmem:[#allocation4 + $0x28] sm:$0xff] %vm376_vm2, %v817_v37 }
 0x32d   : > { %v846_v63 = vld [vmem:[#allocation4 + $0x30] sm:$0xff] }
 0x32e   : > { %v844_v59 = vld [vmem:[#allocation4 + $0x20] sm:$0xff] }
 0x32f   : > { %v847_v62 = vld [vmem:[#allocation4 + $0x38] sm:$0xff] }
 0x330   : > { %v845_v58 = vld [vmem:[#allocation4 + $0x28] sm:$0xff] }
 0x358   : > { %v877_v22 = vpop.permute.xlu1 %876 }
 0x359   : > { %v906_v53 = vmul.f32 %v877_v22, %v842_v30  ;;  %v867_v31 = vpop.permute.xlu0 %866 }
 0x35a   : > { %v904_v29 = vmul.f32 %v867_v31, %v840_v52 }
 0x35b   : > { %914 = vst.msk [vmem:[%s1394_s5 + $0x10] sm:$0xff] %vm376_vm2, %v906_v53 }
 0x35c   : > { %912 = vst.msk [vmem:[%s1394_s5] sm:$0xff] %vm376_vm2, %v904_v29 }
 0x35d   : > { %v882_v33 = vpop.permute.xlu1 %881 }
 0x35e   : > { %v907_v56 = vmul.f32 %v882_v33, %v843_v54 }
 0x360   : > { %v872_v57 = vpop.permute.xlu0 %871  ;;  %915 = vst.msk [vmem:[%s1394_s5 + $0x18] sm:$0xff] %vm376_vm2, %v907_v56 }
 0x361   : > { %v905_v35 = vmul.f32 %v872_v57, %v841_v55 }
 0x363   : > { %913 = vst.msk [vmem:[%s1394_s5 + $0x8] sm:$0xff] %vm376_vm2, %v905_v35 }
 0x375   : > { %v892_v60 = vpop.permute.xlu1 %891 }
 0x376   : > { %v909_v32 = vmul.f32 %v892_v60, %v845_v58  ;;  %v887_v38 = vpop.permute.xlu0 %886 }
 0x377   : > { %v908_v61 = vmul.f32 %v887_v38, %v844_v59 }
 0x378   : > { %917 = vst.msk [vmem:[%s1394_s5 + $0x28] sm:$0xff] %vm376_vm2, %v909_v32 }
 0x379   : > { %916 = vst.msk [vmem:[%s1394_s5 + $0x20] sm:$0xff] %vm376_vm2, %v908_v61  ;;  %v902_v0 = vpop.permute.xlu1 %901 }
 0x37a   : > { %v911_v1 = vmul.f32 %v902_v0, %v847_v62  ;;  %v897_v39 = vpop.permute.xlu0 %896 }
 0x37b   : > { %v910_v2 = vmul.f32 %v897_v39, %v846_v63 }
 0x37c   : > { %919 = vst.msk [vmem:[%s1394_s5 + $0x38] sm:$0xff] %vm376_vm2, %v911_v1 }
 0x37d   : > { %918 = vst.msk [vmem:[%s1394_s5 + $0x30] sm:$0xff] %vm376_vm2, %v910_v2 }
 0x37e PF: > { %s13_s18 = sadd.s32 1, %s1315_s18   ;;  %s1631_s12 = smov %s1303_s15 }
 0x37f   : > { %p10_p11 = scmp.ge.s32.totalorder %s13_s18, 10   ;;  %s1632_s13 = smov %s1307_s16 }
 0x380   : > { %s1633_s14 = smov %s1311_s17  ;;  %s1634_s15 = smov %s1638_s19 }
 0x381   : > { %s1635_s16 = smov %s1642_s20  ;;  %s1636_s17 = smov %s1646_s21 }
 0x382   :  { %12 = sbr.rel (!%p10_p11) target bundleno = 4 (0x4), region = 76 }

</bundles_post_ra>
